<compile_context>
chip_gen: v5e
topology: v5e:2x2
jax: 0.10.0
libtpu: 0.0.40
codegen_flags: <defaults>
</compile_context>

<pallas_src>
import numpy as np
import jax
import jax.numpy as jnp
from jax import lax
from jax.experimental import pallas as pl
from jax.experimental.pallas import tpu as pltpu


# ----------------------------- host-side glue --------------------------------

def _gaussian_kernel1d(ksize, sigma):
    # matches kornia.filters.get_gaussian_kernel1d (ksize is always odd here)
    x = np.arange(ksize, dtype=np.float64) - ksize // 2
    if ksize % 2 == 0:
        x = x + 0.5
    g = np.exp(-(x ** 2) / (2.0 * sigma ** 2))
    return g / g.sum()


def _replicate_blur_matrix(n, ksize, sigma):
    """(n, n) float64 matrix B with B @ x == 1D gaussian blur of x along that
    axis with 'replicate' border padding (separable == kornia 2D blur)."""
    wts = _gaussian_kernel1d(ksize, sigma)
    r = ksize // 2
    B = np.zeros((n, n), dtype=np.float64)
    for p in range(n):
        for tt in range(ksize):
            j = min(max(p + tt - r, 0), n - 1)
            B[p, j] += wts[tt]
    return B


def _round_up(n, m):
    return ((n + m - 1) // m) * m


# ------------------------------- Pallas kernel --------------------------------

def _make_nedt_kernel(h, w, hl, wl, t, epsilon, exp_factor):
    diam2 = float(h * h + w * w)
    exp_scale = float(exp_factor) / float(max(h, w))
    t = float(t)
    epsilon = float(epsilon)

    def edt_rows(src_ref, dst_ref, n_red, n_out, post):
        """dst[r, :] = post( min_k (src[k, :] + (r - k)^2) ) for r in [0, n_out).

        src_ref is (n_red, L): the reduction index k sits on SUBLANES, the
        output minor index is lane-dense; each iteration stores one full-width
        row.  The per-row squared-distance column is iota-generated (no dw/dh
        constant inputs)."""
        kcol = lax.broadcasted_iota(jnp.int32, (n_red, 1), 0).astype(jnp.float32)

        def body(r, carry):
            rf = r.astype(jnp.float32)
            cost = (rf - kcol) ** 2 + src_ref[...]          # (n_red, L)
            row = jnp.min(cost, axis=0, keepdims=True)      # sublane reduce
            dst_ref[pl.ds(r, 1), :] = post(row)
            return carry

        lax.fori_loop(0, n_out, body, 0)

    def kernel(g_ref, b0h_ref, b1h_ref, bwcat_ref, o_ref, seed_ref,
               dataT_ref, p1t_ref, p1_ref):
        # ---- DoG: gaussian blur (replicate border) as matmuls on the MXU ----
        x = g_ref[...]                                              # (h, w)
        # one wide matmul: xw = [x @ b0w^T | x @ b1w^T]   (h, 2w)
        xw = jnp.dot(x, bwcat_ref[...], preferred_element_type=jnp.float32)
        g0 = jnp.dot(b0h_ref[...], xw[:, :w], preferred_element_type=jnp.float32)
        g1 = jnp.dot(b1h_ref[...], xw[:, w:], preferred_element_type=jnp.float32)
        dog = 0.5 + t * (g1 - g0) - epsilon

        # ---- threshold -> squared-distance seed (matches CUDA kernel_dt) ----
        seed = dog > 0.5
        seed_ref[...] = seed.astype(jnp.float32)
        data = jnp.where(seed, 0.0, diam2).astype(jnp.float32)      # (h, w)

        # data transposed (j on sublanes, i lane-dense); padded lanes filled
        # with diam2 so everything downstream is finite & deterministic.
        dataT_ref[...] = jnp.full((w, hl), diam2, jnp.float32)
        dataT_ref[:, :h] = jnp.transpose(data, (1, 0))              # (w, h)

        # ---- EDT pass 1: p1t[pj, i] = min_j dataT[j, i] + (pj - j)^2 --------
        edt_rows(dataT_ref, p1t_ref, w, w, lambda row: row)

        # reorient for pass 2: p1[i, pj] (i on sublanes, pj lane-dense)
        p1_ref[...] = jnp.full((h, wl), diam2, jnp.float32)
        p1_ref[:, :w] = jnp.transpose(p1t_ref[:, :h], (1, 0))       # (h, w)

        # ---- EDT pass 2 + sqrt + exp map, lane-dense output rows ------------
        def expmap(row):
            return 1.0 - jnp.exp(-jnp.sqrt(row) * exp_scale)

        edt_rows(p1_ref, o_ref, h, h, expmap)

    return kernel


# --------------------------------- wrapper ------------------------------------

def _nedt_pallas(img, t, sigma_factor, k, epsilon, kernel_factor, exp_factor):
    bs, ch, h, w = img.shape
    img = img.astype(jnp.float32)

    # kornia.color.rgb_to_grayscale on the first 3 channels (host-side glue)
    if ch in (3, 4):
        gray = 0.299 * img[:, 0] + 0.587 * img[:, 1] + 0.114 * img[:, 2]
    else:
        assert ch == 1
        gray = img[:, 0]

    sigma = h * sigma_factor
    kern0 = max(2 * int(sigma * kernel_factor) + 1, 3)
    kern1 = max(2 * int(sigma * k * kernel_factor) + 1, 3)
    b0h = _replicate_blur_matrix(h, kern0, sigma).astype(np.float32)
    b0w = _replicate_blur_matrix(w, kern0, sigma).astype(np.float32)
    b1h = _replicate_blur_matrix(h, kern1, sigma * k).astype(np.float32)
    b1w = _replicate_blur_matrix(w, kern1, sigma * k).astype(np.float32)
    # right-hand blur matrices pre-transposed and fused on the host -> (w, 2w)
    bwcat = np.concatenate([b0w.T, b1w.T], axis=1).astype(np.float32)

    hl = _round_up(h, 128)   # lane-padded width of the (w, hl) pass-1 planes
    wl = _round_up(w, 128)   # lane-padded width of the (h, wl) output planes

    kernel = _make_nedt_kernel(h, w, hl, wl, float(t), float(epsilon),
                               float(exp_factor), )

    # explicit VMEM budget: double-buffered blocks + scratch + compute slack
    block_bytes = 4 * (h * w + 2 * h * h + 2 * w * w          # inputs
                       + h * wl + h * w)                       # outputs
    scratch_bytes = 4 * (2 * w * hl + h * wl)
    est = 2 * block_bytes + scratch_bytes + (8 << 20)
    vmem_limit = int(min(64 << 20, max(32 << 20, est)))

    out, seed = pl.pallas_call(
        kernel,
        out_shape=(jax.ShapeDtypeStruct((bs, h, wl), jnp.float32),
                   jax.ShapeDtypeStruct((bs, h, w), jnp.float32)),
        grid=(bs,),
        in_specs=[
            pl.BlockSpec((None, h, w), lambda b: (b, 0, 0)),   # gray image
            pl.BlockSpec((h, h), lambda b: (0, 0)),            # b0h
            pl.BlockSpec((h, h), lambda b: (0, 0)),            # b1h
            pl.BlockSpec((w, 2 * w), lambda b: (0, 0)),        # [b0w^T | b1w^T]
        ],
        out_specs=(pl.BlockSpec((None, h, wl), lambda b: (b, 0, 0)),
                   pl.BlockSpec((None, h, w), lambda b: (b, 0, 0))),
        scratch_shapes=[pltpu.VMEM((w, hl), jnp.float32),   # dataT
                        pltpu.VMEM((w, hl), jnp.float32),   # p1 transposed
                        pltpu.VMEM((h, wl), jnp.float32)],  # p1 (pass-2 input)
        compiler_params=pltpu.CompilerParams(
            dimension_semantics=("parallel",),
            vmem_limit_bytes=vmem_limit),
    )(gray, jnp.asarray(b0h), jnp.asarray(b1h), jnp.asarray(bwcat))

    return out[:, :, :w][:, None, :, :], seed


def nedt_forward(img, t=2.0, sigma_factor=1.0 / 540, k=1.6, epsilon=0.01,
                 kernel_factor=4, exp_factor=540.0 / 15):
    out, _ = _nedt_pallas(img, t, sigma_factor, k, epsilon, kernel_factor,
                          exp_factor)
    return out   # (bs, 1, h, w) like the PyTorch module


# --------------------------- numpy references (checks) -------------------------

def _np_gray(img):
    ch = img.shape[1]
    if ch in (3, 4):
        return 0.299 * img[:, 0] + 0.587 * img[:, 1] + 0.114 * img[:, 2]
    return img[:, 0]


def _np_dog_seed(img, t, sigma_factor, k, epsilon, kernel_factor):
    bs, ch, h, w = img.shape
    gray = _np_gray(img)
    sigma = h * sigma_factor
    kern0 = max(2 * int(sigma * kernel_factor) + 1, 3)
    kern1 = max(2 * int(sigma * k * kernel_factor) + 1, 3)
    b0h = _replicate_blur_matrix(h, kern0, sigma)
    b0w = _replicate_blur_matrix(w, kern0, sigma)
    b1h = _replicate_blur_matrix(h, kern1, sigma * k)
    b1w = _replicate_blur_matrix(w, kern1, sigma * k)
    g0 = np.einsum('pi,bij,qj->bpq', b0h, gray, b0w)
    g1 = np.einsum('pi,bij,qj->bpq', b1h, gray, b1w)
    margin = t * (g1 - g0) - epsilon
    dog = 0.5 + t * (g1 - g0) - epsilon
    return (dog > 0.5).astype(np.float64), margin


def _np_edt_expmap(seed_mask, exp_factor):
    bs, h, w = seed_mask.shape
    diam2 = float(h * h + w * w)
    data = (1.0 - seed_mask) * diam2
    j = np.arange(w, dtype=np.float64)
    dwm = (j[:, None] - j[None, :]) ** 2                     # [pj, j]
    p1 = np.minimum((data[:, :, None, :] + dwm[None, None, :, :]).min(-1), diam2)
    i = np.arange(h, dtype=np.float64)
    dhm = (i[:, None] - i[None, :]) ** 2                     # [pi, i]
    p2 = np.minimum((p1[:, None, :, :] + dhm[None, :, :, None]).min(2), diam2)
    return 1.0 - np.exp(-np.sqrt(p2) * exp_factor / max(h, w))


def _np_reference(img, t=2.0, sigma_factor=1.0 / 540, k=1.6, epsilon=0.01,
                  kernel_factor=4, exp_factor=540.0 / 15):
    seed, _ = _np_dog_seed(img, t, sigma_factor, k, epsilon, kernel_factor)
    return _np_edt_expmap(seed, exp_factor)[:, None]


if __name__ == "__main__":
    key = jax.random.PRNGKey(0)
    k1, k2 = jax.random.split(key)

    # ---- test 1: module-default parameters ----------------------------------
    bs, ch, h, w = 2, 4, 16, 16
    img = jax.random.uniform(k1, (bs, ch, h, w), dtype=jnp.float32)
    out = nedt_forward(img)
    out = jax.block_until_ready(out)
    assert out.shape == (bs, 1, h, w) and out.dtype == jnp.float32
    ref = _np_reference(np.asarray(img, dtype=np.float64))
    np.testing.assert_allclose(np.asarray(out), ref, rtol=1e-4, atol=1e-4)

    # ---- test 2: parameters/input that produce real seeds; exercises the
    # per-row EDT loops, lane padding and the non-square path -----------------
    bs2, h2, w2 = 2, 32, 48
    sf2 = 1.0 / 8
    img2 = jnp.zeros((bs2, 1, h2, w2), jnp.float32)
    img2 = img2.at[:, :, 8:24, 12:36].set(1.0)
    img2 = img2 + 0.1 * jax.random.uniform(k2, img2.shape, dtype=jnp.float32)
    out2, seed2 = _nedt_pallas(img2, 2.0, sf2, 1.6, 0.01, 4, 540.0 / 15)
    out2, seed2 = jax.block_until_ready((out2, seed2))
    seed2_np = np.asarray(seed2, dtype=np.float64)
    assert 0 < seed2_np.sum() < seed2_np.size     # EDT sees real seed geometry

    # (a) EDT + exp-map must match a float64 reference evaluated on the
    #     kernel's own seed plane (decoupled from f32 blur rounding).
    ref2 = _np_edt_expmap(seed2_np, 540.0 / 15)
    np.testing.assert_allclose(np.asarray(out2)[:, 0], ref2,
                               rtol=1e-4, atol=1e-4)

    # (b) DoG/threshold smoke-check vs float64, ignoring pixels numerically on
    #     the threshold boundary.
    mask_ref, margin = _np_dog_seed(np.asarray(img2, dtype=np.float64),
                                    2.0, sf2, 1.6, 0.01, 4)
    decisive = np.abs(margin) > 3e-2
    assert np.array_equal(seed2_np[decisive], mask_ref[decisive])

    print("KERNEL_OK")
</pallas_src>

<mosaic_0001>
module attributes {stable_mosaic.version = 11 : i64} {
  func.func @kernel(%arg0: i32, %arg1: memref<1x16x16xf32, #tpu.memory_space<vmem>>, %arg2: memref<16x16xf32, #tpu.memory_space<vmem>>, %arg3: memref<16x16xf32, #tpu.memory_space<vmem>>, %arg4: memref<16x32xf32, #tpu.memory_space<vmem>>, %arg5: memref<1x16x128xf32, #tpu.memory_space<vmem>>, %arg6: memref<1x16x16xf32, #tpu.memory_space<vmem>>, %arg7: memref<16x128xf32, #tpu.memory_space<vmem>>, %arg8: memref<16x128xf32, #tpu.memory_space<vmem>>, %arg9: memref<16x128xf32, #tpu.memory_space<vmem>>) attributes {dimension_semantics = [#tpu.dimension_semantics<parallel>], iteration_bounds = array<i64: 2>, scalar_prefetch = 0 : i64, scratch_operands = 3 : i64, tpu.core_type = #tpu.core_type<tc>, window_params = [{transform_indices = @transform_0, window_bounds = array<i64: 1, 16, 16>}, {pipeline_mode = #tpu.pipeline_mode<synchronous>, transform_indices = @transform_1, window_bounds = array<i64: 16, 16>}, {pipeline_mode = #tpu.pipeline_mode<synchronous>, transform_indices = @transform_2, window_bounds = array<i64: 16, 16>}, {pipeline_mode = #tpu.pipeline_mode<synchronous>, transform_indices = @transform_3, window_bounds = array<i64: 16, 32>}, {transform_indices = @transform_4, window_bounds = array<i64: 1, 16, 128>}, {transform_indices = @transform_5, window_bounds = array<i64: 1, 16, 16>}]} {
    %c0 = arith.constant 0 : index
    %c0_0 = arith.constant 0 : index
    %c0_1 = arith.constant 0 : index
    %0 = vector.load %arg1[%c0, %c0_0, %c0_1] : memref<1x16x16xf32, #tpu.memory_space<vmem>>, vector<1x16x16xf32>
    %1 = vector.shape_cast %0 : vector<1x16x16xf32> to vector<16x16xf32>
    %c0_2 = arith.constant 0 : index
    %c0_3 = arith.constant 0 : index
    %2 = vector.load %arg4[%c0_2, %c0_3] : memref<16x32xf32, #tpu.memory_space<vmem>>, vector<16x32xf32>
    %cst = arith.constant dense<0.000000e+00> : vector<16x32xf32>
    %3 = tpu.matmul %1, %2, %cst {dimension_numbers = #tpu.dot_dimension_numbers<[1], [0], [0], [1], [0, 0, 1, 1], [], []>} : vector<16x16xf32>, vector<16x32xf32>, vector<16x32xf32> -> vector<16x32xf32>
    %c0_4 = arith.constant 0 : index
    %c0_5 = arith.constant 0 : index
    %4 = vector.load %arg2[%c0_4, %c0_5] : memref<16x16xf32, #tpu.memory_space<vmem>>, vector<16x16xf32>
    %5 = vector.extract_strided_slice %3 {offsets = [0, 0], sizes = [16, 16], strides = [1, 1]} : vector<16x32xf32> to vector<16x16xf32>
    %cst_6 = arith.constant dense<0.000000e+00> : vector<16x16xf32>
    %6 = tpu.matmul %4, %5, %cst_6 {dimension_numbers = #tpu.dot_dimension_numbers<[1], [0], [0], [1], [0, 0, 1, 1], [], []>} : vector<16x16xf32>, vector<16x16xf32>, vector<16x16xf32> -> vector<16x16xf32>
    %c0_7 = arith.constant 0 : index
    %c0_8 = arith.constant 0 : index
    %7 = vector.load %arg3[%c0_7, %c0_8] : memref<16x16xf32, #tpu.memory_space<vmem>>, vector<16x16xf32>
    %8 = vector.extract_strided_slice %3 {offsets = [0, 16], sizes = [16, 16], strides = [1, 1]} : vector<16x32xf32> to vector<16x16xf32>
    %cst_9 = arith.constant dense<0.000000e+00> : vector<16x16xf32>
    %9 = tpu.matmul %7, %8, %cst_9 {dimension_numbers = #tpu.dot_dimension_numbers<[1], [0], [0], [1], [0, 0, 1, 1], [], []>} : vector<16x16xf32>, vector<16x16xf32>, vector<16x16xf32> -> vector<16x16xf32>
    %10 = arith.subf %9, %6 : vector<16x16xf32>
    %cst_10 = arith.constant 2.000000e+00 : f32
    %11 = vector.broadcast %cst_10 : f32 to vector<16x16xf32>
    %12 = arith.mulf %11, %10 : vector<16x16xf32>
    %cst_11 = arith.constant 5.000000e-01 : f32
    %13 = vector.broadcast %cst_11 : f32 to vector<16x16xf32>
    %14 = arith.addf %13, %12 : vector<16x16xf32>
    %cst_12 = arith.constant 0.00999999977 : f32
    %15 = vector.broadcast %cst_12 : f32 to vector<16x16xf32>
    %16 = arith.subf %14, %15 : vector<16x16xf32>
    %cst_13 = arith.constant 5.000000e-01 : f32
    %17 = vector.broadcast %cst_13 : f32 to vector<16x16xf32>
    %18 = arith.cmpf ogt, %16, %17 : vector<16x16xf32>
    %19 = arith.extui %18 : vector<16x16xi1> to vector<16x16xi32>
    %20 = arith.sitofp %19 : vector<16x16xi32> to vector<16x16xf32>
    %c0_14 = arith.constant 0 : index
    %c0_15 = arith.constant 0 : index
    %c0_16 = arith.constant 0 : index
    %21 = vector.load %arg6[%c0_14, %c0_15, %c0_16] : memref<1x16x16xf32, #tpu.memory_space<vmem>>, vector<1x16x16xf32>
    %22 = vector.shape_cast %21 : vector<1x16x16xf32> to vector<16x16xf32>
    %23 = vector.shape_cast %20 : vector<16x16xf32> to vector<1x16x16xf32>
    tpu.vector_store %arg6[%c0_14, %c0_15, %c0_16], %23 {strides = array<i32>} : memref<1x16x16xf32, #tpu.memory_space<vmem>>, vector<1x16x16xf32>,
    %cst_17 = arith.constant 0.000000e+00 : f32
    %cst_18 = arith.constant 5.120000e+02 : f32
    %24 = vector.broadcast %cst_17 : f32 to vector<16x16xf32>
    %25 = vector.broadcast %cst_18 : f32 to vector<16x16xf32>
    %26 = arith.select %18, %24, %25 : vector<16x16xi1>, vector<16x16xf32>
    %cst_19 = arith.constant 5.120000e+02 : f32
    %27 = vector.broadcast %cst_19 : f32 to vector<16x128xf32>
    %c0_20 = arith.constant 0 : index
    %c0_21 = arith.constant 0 : index
    %28 = vector.load %arg7[%c0_20, %c0_21] : memref<16x128xf32, #tpu.memory_space<vmem>>, vector<16x128xf32>
    tpu.vector_store %arg7[%c0_20, %c0_21], %27 {strides = array<i32>} : memref<16x128xf32, #tpu.memory_space<vmem>>, vector<16x128xf32>,
    %29 = tpu.transpose %26, [1, 0] : vector<16x16xf32> -> vector<16x16xf32>
    %c0_22 = arith.constant 0 : index
    %c0_23 = arith.constant 0 : index
    %30 = vector.load %arg7[%c0_22, %c0_23] : memref<16x128xf32, #tpu.memory_space<vmem>>, vector<16x16xf32>
    tpu.vector_store %arg7[%c0_22, %c0_23], %29 {strides = array<i32>} : memref<16x128xf32, #tpu.memory_space<vmem>>, vector<16x16xf32>,
    %31 = tpu.iota {dimensions = array<i32: 0>} : vector<16x1xi32>
    %32 = arith.sitofp %31 : vector<16x1xi32> to vector<16x1xf32>
    %c0_i32 = arith.constant 0 : i32
    %c16_i32 = arith.constant 16 : i32
    %33 = arith.addi %c0_i32, %c16_i32 : i32
    %c1_i32 = arith.constant 1 : i32
    scf.for %arg10 = %c0_i32 to %33 step %c1_i32  : i32 {
      %42 = arith.sitofp %arg10 : i32 to f32
      %43 = vector.broadcast %42 : f32 to vector<16x1xf32>
      %44 = arith.subf %43, %32 : vector<16x1xf32>
      %45 = arith.mulf %44, %44 : vector<16x1xf32>
      %c0_36 = arith.constant 0 : index
      %c0_37 = arith.constant 0 : index
      %46 = vector.load %arg7[%c0_36, %c0_37] : memref<16x128xf32, #tpu.memory_space<vmem>>, vector<16x128xf32>
      %47 = vector.broadcast %45 : vector<16x1xf32> to vector<16x128xf32>
      %48 = arith.addf %47, %46 : vector<16x128xf32>
      %cst_38 = arith.constant dense<0x7F800000> : vector<128xf32>
      %49 = vector.multi_reduction <minimumf>, %48, %cst_38 [0] : vector<16x128xf32> to vector<128xf32>
      %50 = vector.shape_cast %49 : vector<128xf32> to vector<1x128xf32>
      %51 = arith.index_cast %arg10 : i32 to index
      %c0_39 = arith.constant 0 : index
      %52 = vector.load %arg8[%51, %c0_39] : memref<16x128xf32, #tpu.memory_space<vmem>>, vector<1x128xf32>
      tpu.vector_store %arg8[%51, %c0_39], %50 {strides = array<i32>} : memref<16x128xf32, #tpu.memory_space<vmem>>, vector<1x128xf32>,
    }
    %c16_i32_24 = arith.constant 16 : i32
    %cst_25 = arith.constant 5.120000e+02 : f32
    %34 = vector.broadcast %cst_25 : f32 to vector<16x128xf32>
    %c0_26 = arith.constant 0 : index
    %c0_27 = arith.constant 0 : index
    %35 = vector.load %arg9[%c0_26, %c0_27] : memref<16x128xf32, #tpu.memory_space<vmem>>, vector<16x128xf32>
    tpu.vector_store %arg9[%c0_26, %c0_27], %34 {strides = array<i32>} : memref<16x128xf32, #tpu.memory_space<vmem>>, vector<16x128xf32>,
    %c0_28 = arith.constant 0 : index
    %c0_29 = arith.constant 0 : index
    %36 = vector.load %arg8[%c0_28, %c0_29] : memref<16x128xf32, #tpu.memory_space<vmem>>, vector<16x16xf32>
    %37 = tpu.transpose %36, [1, 0] : vector<16x16xf32> -> vector<16x16xf32>
    %c0_30 = arith.constant 0 : index
    %c0_31 = arith.constant 0 : index
    %38 = vector.load %arg9[%c0_30, %c0_31] : memref<16x128xf32, #tpu.memory_space<vmem>>, vector<16x16xf32>
    tpu.vector_store %arg9[%c0_30, %c0_31], %37 {strides = array<i32>} : memref<16x128xf32, #tpu.memory_space<vmem>>, vector<16x16xf32>,
    %39 = tpu.iota {dimensions = array<i32: 0>} : vector<16x1xi32>
    %40 = arith.sitofp %39 : vector<16x1xi32> to vector<16x1xf32>
    %c0_i32_32 = arith.constant 0 : i32
    %c16_i32_33 = arith.constant 16 : i32
    %41 = arith.addi %c0_i32_32, %c16_i32_33 : i32
    %c1_i32_34 = arith.constant 1 : i32
    scf.for %arg10 = %c0_i32_32 to %41 step %c1_i32_34  : i32 {
      %42 = arith.sitofp %arg10 : i32 to f32
      %43 = vector.broadcast %42 : f32 to vector<16x1xf32>
      %44 = arith.subf %43, %40 : vector<16x1xf32>
      %45 = arith.mulf %44, %44 : vector<16x1xf32>
      %c0_36 = arith.constant 0 : index
      %c0_37 = arith.constant 0 : index
      %46 = vector.load %arg9[%c0_36, %c0_37] : memref<16x128xf32, #tpu.memory_space<vmem>>, vector<16x128xf32>
      %47 = vector.broadcast %45 : vector<16x1xf32> to vector<16x128xf32>
      %48 = arith.addf %47, %46 : vector<16x128xf32>
      %cst_38 = arith.constant dense<0x7F800000> : vector<128xf32>
      %49 = vector.multi_reduction <minimumf>, %48, %cst_38 [0] : vector<16x128xf32> to vector<128xf32>
      %50 = vector.shape_cast %49 : vector<128xf32> to vector<1x128xf32>
      %51 = math.sqrt %50 : vector<1x128xf32>
      %cst_39 = arith.constant 0.000000e+00 : f32
      %52 = vector.broadcast %cst_39 : f32 to vector<1x128xf32>
      %53 = arith.subf %52, %51 : vector<1x128xf32>
      %cst_40 = arith.constant 2.250000e+00 : f32
      %54 = vector.broadcast %cst_40 : f32 to vector<1x128xf32>
      %55 = arith.mulf %53, %54 : vector<1x128xf32>
      %56 = math.exp %55 : vector<1x128xf32>
      %cst_41 = arith.constant 1.000000e+00 : f32
      %57 = vector.broadcast %cst_41 : f32 to vector<1x128xf32>
      %58 = arith.subf %57, %56 : vector<1x128xf32>
      %c0_42 = arith.constant 0 : index
      %59 = arith.index_cast %arg10 : i32 to index
      %c0_43 = arith.constant 0 : index
      %60 = vector.load %arg5[%c0_42, %59, %c0_43] : memref<1x16x128xf32, #tpu.memory_space<vmem>>, vector<1x1x128xf32>
      %61 = vector.shape_cast %60 : vector<1x1x128xf32> to vector<1x128xf32>
      %62 = vector.shape_cast %58 : vector<1x128xf32> to vector<1x1x128xf32>
      tpu.vector_store %arg5[%c0_42, %59, %c0_43], %62 {strides = array<i32>} : memref<1x16x128xf32, #tpu.memory_space<vmem>>, vector<1x1x128xf32>,
    }
    %c16_i32_35 = arith.constant 16 : i32
    return
  }
  func.func @transform_0(%arg0: i32) -> (i32, i32, i32) {
    %c0_i32 = arith.constant 0 : i32
    %c0_i32_0 = arith.constant 0 : i32
    %c0_i32_1 = arith.constant 0 : i32
    return %arg0, %c0_i32, %c0_i32_0 : i32, i32, i32
  }
  func.func @transform_1(%arg0: i32) -> (i32, i32) {
    %c0_i32 = arith.constant 0 : i32
    %c0_i32_0 = arith.constant 0 : i32
    %c0_i32_1 = arith.constant 0 : i32
    return %c0_i32, %c0_i32_0 : i32, i32
  }
  func.func @transform_2(%arg0: i32) -> (i32, i32) {
    %c0_i32 = arith.constant 0 : i32
    %c0_i32_0 = arith.constant 0 : i32
    %c0_i32_1 = arith.constant 0 : i32
    return %c0_i32, %c0_i32_0 : i32, i32
  }
  func.func @transform_3(%arg0: i32) -> (i32, i32) {
    %c0_i32 = arith.constant 0 : i32
    %c0_i32_0 = arith.constant 0 : i32
    %c0_i32_1 = arith.constant 0 : i32
    return %c0_i32, %c0_i32_0 : i32, i32
  }
  func.func @transform_4(%arg0: i32) -> (i32, i32, i32) {
    %c0_i32 = arith.constant 0 : i32
    %c0_i32_0 = arith.constant 0 : i32
    %c0_i32_1 = arith.constant 0 : i32
    return %arg0, %c0_i32, %c0_i32_0 : i32, i32, i32
  }
  func.func @transform_5(%arg0: i32) -> (i32, i32, i32) {
    %c0_i32 = arith.constant 0 : i32
    %c0_i32_0 = arith.constant 0 : i32
    %c0_i32_1 = arith.constant 0 : i32
    return %arg0, %c0_i32, %c0_i32_0 : i32, i32, i32
  }
}

</mosaic_0001>

<bundles_post_ra>
// kernel: tpu_custom_call.1
= control target key start
LH: loop header
LB: loop body
LE: loop exit
PB: predicated region body
PF: predicated region fallthrough
CT: control target
= control target key end

     0   :  { %s1437_s0 = inlined_call_operand.hbm [shape: f32[2,16,16], index: 0, kind: input, shape index: {}]   ;;  %s1438_s1 = inlined_call_operand.hbm [shape: f32[16,16], index: 1, kind: input, shape index: {}]   ;;  %s1439_s2 = inlined_call_operand.hbm [shape: f32[16,16], index: 2, kind: input, shape index: {}]   ;;  %s1440_s3 = inlined_call_operand.hbm [shape: f32[16,32], index: 3, kind: input, shape index: {}]   ;;  %s1441_s4 = inlined_call_operand.hbm [shape: f32[2,16,128], index: 4, kind: output, shape index: {0}]   ;;  %s1442_s5 = inlined_call_operand.hbm [shape: f32[2,16,16], index: 5, kind: output, shape index: {1}]  }
   0x1   :  { %1444 = sst [smem:[#allocation21_spill]] %s1437_s0 }
   0x2   :  { %11 = vsyncpa [#allocation6], 0 }
   0x3   :  { %13 = vsyncpa [#allocation6 + $0x1], 0 }
   0x4   :  { %14 = vsyncpa [#allocation9], 0 }
   0x5   :  { %15 = vsyncpa [#allocation12], 0 }
   0x6   :  { %16 = vsyncpa [#allocation7], 0 }
   0x7   :  { %18 = vsyncpa [#allocation7 + $0x1], 0 }
   0x8   :  { %19 = vsyncpa [#allocation15], 0 }
   0x9   :  { %21 = vsyncpa [#allocation15 + $0x1], 0  ;;  %s1196_s18 = smov 0   ;;  %s1198_s19 = smov 0  }
   0xa   :  { %s1200_s20 = smov 0   ;;  %s1202_s21 = smov 0  }
   0xb LB: > { %s1217_s22 = sadd.s32 4294967295, %s1146_s21   ;;  %s759_s23 = sadd.s32 4294967294, %s1146_s21   ;;  %s1146_s21 = sphi %s1202_s21, %s1457_s21   ;;  %s1142_s20 = sphi %s1200_s20, %s1456_s20   ;;  %s1138_s19 = sphi %s1198_s19, %s1455_s19   ;;  %s1134_s18 = sphi %s1196_s18, %s1454_s18  }
   0xc   : > { %p47_p0 = scmp.ne.s32.totalorder %s1138_s19, %s1134_s18  ;;  %p48_p1 = scmp.eq.s32.totalorder %s1217_s22, 0 }
   0xd   : > { %p134_p2 = scmp.eq.s32.totalorder %s1217_s22, 1  ;;  %p140_p3 = scmp.eq.s32.totalorder %s759_s23, 1 }
   0xe   : > { %p1226_p4 = por %p48_p1, %p47_p0  ;;  %p760_p5 = scmp.ge.s32.totalorder %s1146_s21, 1 }
   0xf   : > { %p1231_p6 = por %p140_p3, %p47_p0  ;;  %p173_p7 = scmp.lt.s32.totalorder %s1146_s21, 3 }
  0x10   : > { %s184_s28 = sshll.u32 %s1438_s1, 4  ;;  %s1156_s30 = smov [#allocation8]   ;;  %s185_s28 = int_to_ptr.hbm [resolvable:$true] %s184_s28 }
  0x11   : > { %p1239_p8 = pnand %p760_p5, %p173_p7  ;;  %s186_s6 = sshll.u32 %s1156_s30, 4  ;;  %s187_s6 = int_to_ptr.vmem [resolvable:$true] %s186_s6 }
  0x12   : > { %s198_s10 = sshll.u32 %s1439_s2, 4  ;;  %s1443_s11 = smov 128   ;;  %s199_s10 = int_to_ptr.hbm [resolvable:$true] %s198_s10 }
  0x13   : > { %p816_p9 = pneg %p1239_p8  ;;  %s1158_s12 = smov 8  }
  0x14   : > { %s1159_s13 = smov [#allocation10]   ;;  %s212_s17 = sshll.u32 %s1440_s3, 4  ;;  %s213_s17 = int_to_ptr.hbm [resolvable:$true] %s212_s17 }
  0x15   : > { %p1247_p10 = pnand %p816_p9, %p48_p1  ;;  %s200_s14 = sshll.u32 %s1159_s13, 4  ;;  %s201_s14 = int_to_ptr.vmem [resolvable:$true] %s200_s14 }
  0x16   : > { %s1160_s23 = smov [#allocation11]   ;;  %s1269_s27 = sadd.s32 1, %s1146_s21  }
  0x17   : > { %819 = dma.hbm_to_vmem [thread:$0]  (!%p1247_p10), %s185_s28, 256, %s187_s6, [#allocation9], %s1443_s11, %s1443_s11, %s1158_s12  }
  0x18   : > { %822 = dma.hbm_to_vmem [thread:$0]  (!%p1247_p10), %s199_s10, 256, %s201_s14, [#allocation9], %s1443_s11, %s1443_s11, %s1158_s12  }
  0x19   : > { %s214_s26 = sshll.u32 %s1160_s23, 4  ;;  %s31_s28 = ssub.s32 %s1146_s21, %s1269_s27  ;;  %s215_s26 = int_to_ptr.vmem [resolvable:$true] %s214_s26 }
  0x1a   : > { %825 = dma.hbm_to_vmem [thread:$0]  (!%p1247_p10), %s213_s17, 256, %s215_s26, [#allocation12], %s1443_s11, %s1443_s11, %s1158_s12  }
  0x1b   : > { %s34_s30 = sadd.s32 1, %s1142_s20  ;;  %p32_p12 = scmp.eq.s32.totalorder %s31_s28, 0 }
  0x1c   : > { %p41_p13 = scmp.ne.s32.totalorder %s1142_s20, %s1138_s19  ;;  %p42_p0 = scmp.eq.s32.totalorder %s1146_s21, 0 }
  0x1d   : > { %s1283_s6 = scalar_select %p32_p12, %s1142_s20, %s34_s30  }
  0x1e   : > { %p1287_p3 = por %p134_p2, %p41_p13  ;;  %p840_p5 = scmp.lt.s32.totalorder %s1146_s21, 2 }
  0x1f   : > { %s228_s9 = sand.u32 1, %s1142_s20   ;;  %s793_s7 = sshll.u32 %s1146_s21, 4 }
  0x20   : > { %p43_p7 = por %p42_p0, %p41_p13  ;;  %s765_s10 = sshll.u32 %s228_s9, 4 }
  0x21   : > { %s1450_s0 = sld [smem:[#allocation21_spill]]  ;;  %s232_s17 = scalar_lea.vmem [#allocation5], %s765_s10 }
  0x22   : > { %s240_s23 = sshll.u32 %s232_s17, 4  ;;  %p1297_p9 = pnand %p840_p5, %p43_p7  ;;  %s241_s23 = int_to_ptr.vmem [resolvable:$true] %s240_s23 }
  0x23   : > { %s229_s28 = scalar_lea.sflag [#allocation6], %s228_s9 }
  0x24   : > { %p1006_p10 = pneg %p1297_p9 }
  0x27   : > { %s237_s15 = scalar_lea.hbm %s1450_s0, %s793_s7  ;;  %s1009_s10 = scalar_lea.hbm %s1450_s0, 32 }
  0x28   : > { %s238_s16 = sshll.u32 %s237_s15, 4  ;;  %s239_s16 = int_to_ptr.hbm [resolvable:$true] %s238_s16 }
  0x29   : > { %s1002_s30 = sshra.s32 %s239_s16, 4  ;;  %s1003_s30 = int_to_ptr.hbm [resolvable:$true] %s1002_s30 }
  0x2a   : > { %s1004_s11 = scalar_lea.hbm %s1003_s30, 16  ;;  %p1010_p0 = scmp.lt.s32.totalorder %s1003_s30, %s1450_s0 }
  0x2b   : > { %p1005_p2 = scmp.ne.s32.totalorder %s1003_s30, %s1004_s11  ;;  %p1011_p5 = scmp.lt.s32.totalorder %s1009_s10, %s1004_s11 }
  0x2d   : > { %p1007_p12 = pnand %p1006_p10, %p1005_p2  ;;  %p1012_p7 = por %p1011_p5, %p1010_p0 }
  0x2f   : > { %p1008_p13 = pneg %p1007_p12 }
  0x31   : > { %p1013_p11 = pnand %p1012_p7, %p1008_p13 }
  0x33   : > { %1016 = shalt.err (!%p1013_p11)
}
  0x34   : > { %s1452_s9 = smov 128   ;;  %252 = sbr.rel (%p1239_p8) target bundleno = 918 (0x396), region = 36 }
  0x35   : > { %829 = dma.hbm_to_vmem [thread:$0]  (!%p1297_p9), %s239_s16, 256, %s241_s23, %s229_s28, %s1452_s9, %s1452_s9, %s1158_s12  }
  0x36   : > { %s1317_s17 = sand.u32 (!%p1239_p8), 1, %s1138_s19  }
  0x37   : > { %s1320_s30 = sshll.u32 (!%p1239_p8), %s1317_s17, 4  ;;  %s255_s11 = scalar_lea.sflag (!%p1239_p8), [#allocation6], %s1317_s17 }
  0x38   : > { %s258_s7 = scalar_lea.vmem (!%p1239_p8), [#allocation5], %s1320_s30 }
  0x39   : > { %1113 = dma.done.wait (%p1226_p4), %s255_s11, 256  }
  0x3a   : > { %1115 = vsyncadd (%p1226_p4), %s255_s11, 4294967040 }
  0x3b   : > { %1117 = dma.done.wait (%p48_p1), [#allocation9], 512  }
  0x3c   : > { %1119 = vsyncadd (%p48_p1), [#allocation9], 4294966784 }
  0x3d   : > { %1121 = dma.done.wait (%p48_p1), [#allocation12], 256  }
  0x3e   : > { %1123 = vsyncadd (%p48_p1), [#allocation12], 4294967040  ;;  %v309_v0 = vld [vmem:[#allocation11 + $0x8] sm:$0xff]  ;;  %v308_v1 = vld [vmem:[#allocation11] sm:$0xff]  ;;  %vm310_vm0 = vcmask 130048   ;;  %s1161_s24 = smov 112   ;;  %v464_v32 = vlaneseq }
  0x3f   : > { %796 = vmatpush.msra.mxu3 %v309_v0  ;;  %v307_v2 = vld [vmem:[%s258_s7 + $0x8] sm:$0xff]  ;;  %331 = vmatpush.msra.mxu0 %v309_v0  ;;  %v306_v3 = vld [vmem:[%s258_s7] sm:$0xff]  ;;  %v1162_v14 = vmov 512.0   ;;  %v1163_v25 = vmov 0.0   ;;  %s1346_s29 = scalar_lea.vmem [#allocation14], %s1320_s30  ;;  %s298_s12 = scalar_lea.vmem [#allocation13], %s1320_s30 }
  0x40   : > { %v340_v7 = vld [vmem:[#allocation8] sm:$0xff]  ;;  %v341_v8 = vld [vmem:[#allocation8 + $0x8] sm:$0xff]  ;;  %v371_v12 = vld [vmem:[#allocation10] sm:$0xff]  ;;  %428 = vst [vmem:[#allocation2] sm:$0xff] %v1162_v14  ;;  %v1353_v33 = vshrl.u32 %v464_v32, 7  ;;  %s1148_s16 = smov 0  }
  0x41   : > { %797 = vmatpush.msra.mxu3 %v308_v1  ;;  %332 = vmatpush.msra.mxu0 %v308_v1  ;;  %v372_v13 = vld [vmem:[#allocation10 + $0x8] sm:$0xff]  ;;  %429 = vst [vmem:[#allocation2 + $0x8] sm:$0xff] %v1162_v14 }
  0x42   : > { %776 = vmatmul.msk.f32.vlgmr.msra.gmra.mxu3 %vm310_vm0, %v307_v2  ;;  %775 = vmatmul.msk.f32.vlgmr.msra.gmra.mxu0 %vm310_vm0, %v306_v3  ;;  %v1356_v34 = vadd.s32 8, %v1353_v33  ;;  %v467_v35 = vcvt.s32.f32 %v1353_v33 }
  0x44   : > { %v468_v36 = vcvt.s32.f32 %v1356_v34 }
  0xbf   : > { %v334_v4 = vpop.f32.mrf.mxu0 }
  0xc5   : > { %v337_v5 = vpop.f32.mrf.mxu3 }
  0xc6   : > { %v903_v6 = vpack.i.bf16 %v334_v4, %v337_v5  ;;  %362 = vmatpush.msra.mxu1 %v337_v5 }
  0xc8   : > { %904 = vrot.lane.b32.xlu0 %v903_v6, %s1161_s24  ;;  %363 = vmatpush.msra.mxu1 %v334_v4 }
  0xc9   : > { %777 = vmatmul.msk.f32.vlgmr.msra.gmra.mxu1 %vm310_vm0, %v340_v7 }
  0xd1   : > { %778 = vmatmul.msk.f32.gmra.mxu1 %vm310_vm0, %v341_v8 }
 0x13a   : > { %v905_v9 = vpop.permute.xlu0 %904 }
 0x13b   : > { %v906_v10 = vunpack.i.l.bf16 %v905_v9  ;;  %v907_v11 = vunpack.i.h.bf16 %v905_v9 }
 0x13d   : > { %401 = vmatpush.msra.mxu2 %v906_v10 }
 0x13f   : > { %402 = vmatpush.msra.mxu2 %v907_v11 }
 0x140   : > { %779 = vmatmul.msk.f32.vlgmr.msra.gmra.mxu2 %vm310_vm0, %v371_v12 }
 0x146   : > { %v365_v15 = vpop.f32.mrf.mxu1 }
 0x148   : > { %780 = vmatmul.msk.f32.gmra.mxu2 %vm310_vm0, %v372_v13 }
 0x14e   : > { %v368_v20 = vpop.f32.mrf.mxu1 }
 0x1c3   : > { %v404_v16 = vpop.f32.mrf.mxu2 }
 0x1c4   : > { %v410_v17 = vsub.f32 %v404_v16, %v365_v15 }
 0x1c6   : > { %v412_v18 = vmul.f32 2.0, %v410_v17 }
 0x1c8   : > { %v414_v19 = vadd.f32 0.5, %v412_v18 }
 0x1ca   : > { %v781_v21 = vadd.f32 -0.01, %v414_v19 }
 0x1cb   : > { %v407_v22 = vpop.f32.mrf.mxu2 }
 0x1cc   : > { %v411_v23 = vsub.f32 %v407_v22, %v368_v20  ;;  %vm418_vm1 = vcmp.gt.f32.partialorder %v781_v21, 0.5 }
 0x1cd   : > { %v426_v24 = vsel %vm418_vm1, 0.0, %v1162_v14  ;;  %v783_v26 = vsel %vm418_vm1, 1.0, %v1163_v25 }
 0x1ce   : > { %v413_v27 = vmul.f32 2.0, %v411_v23  ;;  %430 = vxpose.xlu0.b32.start [1/2] (short) (narrow) %v426_v24, 16  ;;  %424 = vst.msk [vmem:[%s1346_s29] sm:$0xff] %vm310_vm0, %v783_v26 }
 0x1d0   : > { %v415_v28 = vadd.f32 0.5, %v413_v27 }
 0x1d2   : > { %v782_v29 = vadd.f32 -0.01, %v415_v28 }
 0x1d4   : > { %vm419_vm2 = vcmp.gt.f32.partialorder %v782_v29, 0.5 }
 0x1d5   : > { %v784_v30 = vsel %vm419_vm2, 1.0, %v1163_v25  ;;  %v427_v31 = vsel %vm419_vm2, 0.0, %v1162_v14 }
 0x1d6   : > { %425 = vst.msk [vmem:[%s1346_s29 + $0x8] sm:$0xff] %vm310_vm0, %v784_v30  ;;  %431 = vxpose.xlu0.b32.end [2/2] (short) (narrow) %v427_v31, 16 }
 0x272   : > { %v446_v37 = vpop.trf.xlu0 }
 0x273   : > { %462 = vst.msk [vmem:[#allocation2] sm:$0xff] %vm310_vm0, %v446_v37 }
 0x27a   : > { %v447_v38 = vpop.trf.xlu0 }
 0x27b   : > { %463 = vst.msk [vmem:[#allocation2 + $0x8] sm:$0xff] %vm310_vm0, %v447_v38 }
 0x27c LB: >> { %s475_s23 = scvt.s32.f32 %s1150_s16  ;;  %v481_v42 = vld [vmem:[#allocation2] sm:$0xff]  ;;  %s492_s26 = scalar_lea.vmem [#allocation3], %s1150_s16  ;;  %s1150_s16 = sphi %s1148_s16, %s474_s16  }
 0x27d   : >> { %s474_s16 = sadd.s32 1, %s1150_s16  }
 0x27e   : >> { %v476_v39 = vstv %s475_s23  ;;  %p471_p1 = scmp.ge.s32.totalorder %s474_s16, 16  }
 0x27f   : >> { %v477_v40 = vsub.f32 %v476_v39, %v467_v35  ;;  %v478_v41 = vsub.f32 %v476_v39, %v468_v36  ;;  %494 = vst [vmem:[#allocation4] sm:$0xff] (%p471_p1), %v1162_v14  ;;  %s1371_s28 = smov (%p471_p1), 0  }
 0x280   : > { %495 = vst [vmem:[#allocation4 + $0x8] sm:$0xff] (%p471_p1), %v1162_v14 }
 0x281   : >> { %v479_v44 = vmul.f32 %v477_v40, %v477_v40  ;;  %v480_v45 = vmul.f32 %v478_v41, %v478_v41 }
 0x282   : >> { %v482_v43 = vld [vmem:[#allocation2 + $0x8] sm:$0xff] }
 0x283   : >> { %v483_v46 = vadd.f32 %v481_v42, %v479_v44  ;;  %v484_v47 = vadd.f32 %v482_v43, %v480_v45 }
 0x285   : >> { %v485_v48 = vmin.f32 %v483_v46, %v484_v47 }
 0x287   : >> { %v486_v49 = vrot.slane %v485_v48, 4 }
 0x289   : >> { %v487_v50 = vmin.f32 %v485_v48, %v486_v49 }
 0x28b   : >> { %v488_v51 = vrot.slane %v487_v50, 2 }
 0x28d   : >> { %v489_v52 = vmin.f32 %v487_v50, %v488_v51 }
 0x28f   : >> { %v490_v53 = vrot.slane %v489_v52, 1  ;;  %473 = sbr.rel (!%p471_p1) target bundleno = 636 (0x27c), region = 126 }
 0x291   : >> { %v491_v54 = vmin.f32 %v489_v52, %v490_v53 }
 0x293   : >> { %493 = vst [vmem:[%s492_s26] sm:$0x1] %v491_v54 }
 0x29a   : > { %v496_v55 = vld [vmem:[#allocation3] sm:$0xff]  ;;  %v497_v56 = vld [vmem:[#allocation3 + $0x8] sm:$0xff] }
 0x29b   : > { %498 = vxpose.xlu0.b32.start [1/2] (short) (narrow) %v496_v55, 16 }
 0x2a3   : > { %499 = vxpose.xlu0.b32.end [2/2] (short) (narrow) %v497_v56, 16 }
 0x33f   : > { %v514_v57 = vpop.trf.xlu0 }
 0x340   : > { %530 = vst.msk [vmem:[#allocation4] sm:$0xff] %vm310_vm0, %v514_v57 }
 0x347   : > { %v515_v58 = vpop.trf.xlu0 }
 0x348   : > { %531 = vst.msk [vmem:[#allocation4 + $0x8] sm:$0xff] %vm310_vm0, %v515_v58 }
 0x349 LB: >> { %s538_s13 = scvt.s32.f32 %s1154_s28  ;;  %v544_v62 = vld [vmem:[#allocation4] sm:$0xff]  ;;  %s572_s10 = scalar_lea.vmem %s298_s12, %s1154_s28 [#allocation13]  ;;  %s1154_s28 = sphi %s1371_s28, %s537_s28  }
 0x34a   : >> { %s537_s28 = sadd.s32 1, %s1154_s28  }
 0x34b   : >> { %v539_v59 = vstv %s538_s13  ;;  %p534_p4 = scmp.ge.s32.totalorder %s537_s28, 16  }
 0x34c   : >> { %v540_v60 = vsub.f32 %v539_v59, %v467_v35  ;;  %v541_v61 = vsub.f32 %v539_v59, %v468_v36  ;;  %s794_s14 = sshll.u32 (%p534_p4), %s1217_s22, 4  ;;  %s592_s7 = sshll.u32 (%p534_p4), %s298_s12, 4  ;;  %s593_s7 = int_to_ptr.vmem [resolvable:$true] %s592_s7 }
 0x34d   : > { %s591_s11 = scalar_lea.hbm (%p534_p4), %s1441_s4, %s794_s14  ;;  %s575_s16 = scalar_lea.sflag (%p534_p4), [#allocation7], %s1317_s17 }
 0x34e   : >> { %v542_v0 = vmul.f32 %v540_v60, %v540_v60  ;;  %v543_v1 = vmul.f32 %v541_v61, %v541_v61  ;;  %s594_s24 = sshll.u32 (%p534_p4), %s591_s11, 4  ;;  %s1052_s22 = scalar_lea.hbm (%p534_p4), %s1441_s4, 32  ;;  %s595_s24 = int_to_ptr.hbm [resolvable:$true] %s594_s24 }
 0x34f   : >> { %v545_v63 = vld [vmem:[#allocation4 + $0x8] sm:$0xff]  ;;  %s1046_s23 = sshra.s32 (%p534_p4), %s595_s24, 4  ;;  %s1047_s23 = int_to_ptr.hbm [resolvable:$true] %s1046_s23 }
 0x350   : >> { %v546_v2 = vadd.f32 %v544_v62, %v542_v0  ;;  %v547_v3 = vadd.f32 %v545_v63, %v543_v1  ;;  %s1048_s26 = scalar_lea.hbm (%p534_p4), %s1047_s23, 16  ;;  %p1053_p2 = scmp.lt.s32.totalorder (%p534_p4), %s1047_s23, %s1441_s4 }
 0x351   : > { %p1049_p8 = scmp.ne.s32.totalorder (%p534_p4), %s1047_s23, %s1048_s26  ;;  %p1054_p10 = scmp.lt.s32.totalorder (%p534_p4), %s1052_s22, %s1048_s26 }
 0x352   : >> { %v548_v4 = vmin.f32 %v546_v2, %v547_v3 }
 0x353   : > { %p1050_p11 = pnand (%p534_p4), %p1049_p8, %p1287_p3  ;;  %p1055_p12 = por (%p534_p4), %p1054_p10, %p1053_p2 }
 0x354   : >> { %v549_v5 = vrot.slane %v548_v4, 4 }
 0x355   : > { %p1051_p9 = pneg (%p534_p4), %p1050_p11 }
 0x356   : >> { %v550_v6 = vmin.f32 %v548_v4, %v549_v5 }
 0x357   : > { %p1056_p13 = pnand (%p534_p4), %p1055_p12, %p1051_p9 }
 0x358   : >> { %v551_v7 = vrot.slane %v550_v6, 2 }
 0x35a   : >> { %v552_v8 = vmin.f32 %v550_v6, %v551_v7 }
 0x35c   : >> { %v553_v9 = vrot.slane %v552_v8, 1 }
 0x35e   : >> { %v554_v10 = vmin.f32 %v552_v8, %v553_v9 }
 0x360   : >> { %908 = vrsqrt.f32 %v554_v10  ;;  %vm562_vm3 = vcmp.eq.f32.partialorder %v554_v10, inf  ;;  %v565_v17 = vand.u32 2147483648, %v554_v10  ;;  %vm564_vm4 = vcmp.eq.f32.partialorder %v554_v10, 0.0 }
 0x366   : >> { %v909_v11 = vpop.eup %908 }
 0x367   : >> { %v556_v12 = vmul.f32 %v909_v11, %v554_v10 }
 0x369   : >> { %v557_v13 = vmul.f32 %v909_v11, %v556_v12 }
 0x36b   : >> { %v558_v14 = vmul.f32 0.5, %v557_v13 }
 0x36d   : >> { %v559_v15 = vsub.f32 1.5, %v558_v14 }
 0x36f   : >> { %v560_v16 = vmul.f32 %v909_v11, %v559_v15 }
 0x371   : >> { %v561_v18 = vmul.f32 %v560_v16, %v554_v10 }
 0x373   : >> { %v563_v19 = vsel %vm562_vm3, %v554_v10, %v561_v18 }
 0x374   : >> { %v566_v20 = vsel %vm564_vm4, %v565_v17, %v563_v19 }
 0x375   : >> { %v567_v21 = vsub.f32 0.0, %v566_v20 }
 0x377   : >> { %v568_v22 = vmul.f32 2.25, %v567_v21 }
 0x379   : >> { %v569_v23 = vmul.f32 1.442695, %v568_v22 }
 0x37b   : >> { %910 = vpow2.f32 %v569_v23 }
 0x380   : > { %536 = sbr.rel (!%p534_p4) target bundleno = 841 (0x349), region = 137 }
 0x381   : >> { %v911_v24 = vpop.eup %910 }
 0x382   : >> { %v571_v25 = vsub.f32 1.0, %v911_v24 }
 0x384   : >> { %573 = vst [vmem:[%s572_s10] sm:$0x1] %v571_v25 }
 0x385   : > { %1059 = shalt.err (!%p1056_p13)
}
 0x386   : > { %s1164_s30 = smov 128   ;;  %s1165_s12 = smov 8  }
 0x387   : > { %812 = dma.vmem_to_hbm [thread:$0]  (%p1287_p3), %s593_s7, 256, %s595_s24, %s575_s16, %s1164_s30, %s1164_s30, %s1165_s12  }
 0x388   : > { %s608_s28 = scalar_lea.hbm %s1442_s5, %s794_s14  ;;  %s609_s13 = sshll.u32 %s1346_s29, 4  ;;  %s610_s13 = int_to_ptr.vmem [resolvable:$true] %s609_s13 }
 0x389   : > { %s611_s10 = sshll.u32 %s608_s28, 4  ;;  %s580_s23 = scalar_lea.sflag [#allocation15], %s1317_s17  ;;  %s612_s10 = int_to_ptr.hbm [resolvable:$true] %s611_s10 }
 0x38a   : > { %s1074_s26 = sshra.s32 %s612_s10, 4  ;;  %s1080_s7 = scalar_lea.hbm %s1442_s5, 32  ;;  %s1075_s26 = int_to_ptr.hbm [resolvable:$true] %s1074_s26 }
 0x38b   : > { %s1076_s22 = scalar_lea.hbm %s1075_s26, 16  ;;  %p1081_p1 = scmp.lt.s32.totalorder %s1075_s26, %s1442_s5 }
 0x38c   : > { %p1077_p0 = scmp.ne.s32.totalorder %s1075_s26, %s1076_s22  ;;  %p1082_p4 = scmp.lt.s32.totalorder %s1080_s7, %s1076_s22 }
 0x38e   : > { %p1078_p5 = pnand %p1077_p0, %p1287_p3  ;;  %p1083_p8 = por %p1082_p4, %p1081_p1 }
 0x390   : > { %p1079_p7 = pneg %p1078_p5 }
 0x392   : > { %p1084_p11 = pnand %p1083_p8, %p1079_p7 }
 0x394   : > { %1087 = shalt.err (!%p1084_p11)
}
 0x395   : > { %813 = dma.vmem_to_hbm [thread:$0]  (%p1287_p3), %s610_s13, 256, %s612_s10, %s580_s23, %s1164_s30, %s1164_s30, %s1165_s12  }
 0x396 PF: > { %s626_s17 = sand.u32 1, %s1134_s18   ;;  %p1453_p9 = scmp.ge.s32.totalorder %s1146_s21, 2 }
 0x397   : > { %s627_s0 = scalar_lea.sflag [#allocation7], %s626_s17 }
 0x398   : > { %p831_p2 = pnand %p1453_p9, %p1231_p6 }
 0x39a   : > { %p832_p10 = pneg %p831_p2 }
 0x39c   : > { %1125 = dma.done.wait (%p832_p10), %s627_s0, 256  }
 0x39d   : > { %1127 = vsyncadd (%p832_p10), %s627_s0, 4294967040  ;;  %s637_s29 = scalar_lea.sflag [#allocation15], %s626_s17 }
 0x39e   : > { %1129 = dma.done.wait (%p832_p10), %s637_s29, 256  }
 0x39f   : > { %1131 = vsyncadd (%p832_p10), %s637_s29, 4294967040  ;;  %p24_p3 = scmp.ge.s32.totalorder %s1269_s27, 4   ;;  %s1454_s18 = smov %s1138_s19 }
 0x3a0   : > { %s1455_s19 = smov %s1142_s20  ;;  %s1456_s20 = smov %s1283_s6 }
 0x3a1   : > { %s1457_s21 = smov %s1269_s27  ;;  %26 = sbr.rel (!%p24_p3) target bundleno = 11 (0xb), region = 148 }
 0x3a6   :  { %643 = vsyncpa [#allocation6], 1 }
 0x3a7   :  { %645 = vsyncpa [#allocation6 + $0x1], 1 }
 0x3a8   :  { %646 = vsyncpa [#allocation9], 1 }
 0x3a9   :  { %647 = vsyncpa [#allocation12], 1 }
 0x3aa   :  { %648 = vsyncpa [#allocation7], 1 }
 0x3ab   :  { %650 = vsyncpa [#allocation7 + $0x1], 1 }
 0x3ac   :  { %651 = vsyncpa [#allocation15], 1 }
 0x3ad   :  { %653 = vsyncpa [#allocation15 + $0x1], 1 }

</bundles_post_ra>
